<compile_context>
chip_gen: v7x
topology: tpu7x:2x2x1
jax: 0.10.0
libtpu: 0.0.40
codegen_flags: <defaults>
</compile_context>

<pallas_src>
import functools

import jax
import jax.numpy as jnp
from jax.experimental import pallas as pl
from jax.experimental.pallas import tpu as pltpu


_VMEM_LIMIT = 32 * 1024 * 1024     # scoped-VMEM budget, safe on v5e/v6e/v7x
_TILE_BUDGET = 24 * 1024 * 1024    # headroom under the limit for tile picking
_LANE = 128


def _round_up(n, m):
    return ((n + m - 1) // m) * m


def _pick_tile(n, fits, candidates=(2048, 1024, 512, 256, 128)):
    """Largest MXU-friendly tile that divides n and passes the VMEM estimate."""
    for t in candidates:
        if n % t == 0 and fits(t):
            return t
    return _LANE   # n is always padded to a multiple of 128


# ----------------------------- Pallas kernels ------------------------------

def _conv1_kernel(at_ref, xs_ref, xd_ref, wrel_ref, wroot_ref, b_ref,
                  wmr_ref, wmo_ref, trel_ref, troot_ref, acc_ref):
    """Transposed GraphConv1 + ReLU + mean-folded conv2 projections.

    For one (graph b, dst-node tile j, src-node tile k) grid step:
      agg^T[c, dst] += sum_src X^T[c, src] * A^T[src, dst]     (f32 accumulate)
    and at the last k step:
      h[:, dst]   = relu(W_rel1^T agg[:, dst] + W_root1^T X^T[:, dst] + b_rel1)
      t_rel[dst]  = mean(W_rel2, 1) · h[:, dst]   (conv2 aggregation input)
      t_root[dst] = mean(W_root2,1) · h[:, dst]   (conv2 root term, pre-summed)
    so the [H, num_nodes] hidden state never hits HBM.
    """
    k = pl.program_id(2)

    @pl.when(k == 0)
    def _():
        acc_ref[...] = jnp.zeros_like(acc_ref)

    # bf16 x bf16 -> f32 on the MXU (A^T and X^T are pre-cast in the wrapper).
    acc_ref[...] += jnp.dot(xs_ref[...], at_ref[...],
                            preferred_element_type=jnp.float32)

    @pl.when(k == pl.num_programs(2) - 1)
    def _():
        # Epilogue kept in f32 for accuracy; C and H are small so these skinny
        # matmuls are noise next to the bf16 aggregation above.
        # TODO(synk): for C,H >= 64 fuse them into one bf16 MXU pass with a
        # concatenated [W_rel1^T | W_root1^T] weight.
        h = jnp.dot(wrel_ref[...], acc_ref[...],
                    preferred_element_type=jnp.float32)
        h = h + jnp.dot(wroot_ref[...], xd_ref[...].astype(jnp.float32),
                        preferred_element_type=jnp.float32)
        h = jnp.maximum(h + b_ref[...], 0.0)                       # [H, tn] f32
        trel_ref[...] = jnp.dot(wmr_ref[...], h,
                                preferred_element_type=jnp.float32
                                ).astype(trel_ref.dtype)           # [1, tn]
        troot_ref[...] = jnp.dot(wmo_ref[...], h,
                                 preferred_element_type=jnp.float32)


def _conv2_ln_kernel(at_ref, trel_ref, troot_ref, b2_ref, gamma_ref, beta_ref,
                     o_ref, acc_ref, *, num_gene, eps):
    """Mean-folded GraphConv2 (gene columns only) -> LayerNorm -> log_softmax.

    Grid is (graph b, src-node tile k); only the first Gpad (>= num_gene)
    destination columns of A^T are ever DMA'd or multiplied.
    """
    k = pl.program_id(1)

    @pl.when(k == 0)
    def _():
        acc_ref[...] = jnp.zeros_like(acc_ref)

    # row[dst] += sum_src t_rel[src] * A^T[src, dst]  over this src tile
    acc_ref[...] += jnp.dot(trel_ref[...], at_ref[...],
                            preferred_element_type=jnp.float32)    # [1, Gpad]

    @pl.when(k == pl.num_programs(1) - 1)
    def _():
        row = acc_ref[...] + troot_ref[...] + b2_ref[...]
        y = row[:, :num_gene]                                      # gene slice

        # LayerNorm(num_gene): biased variance, matches torch defaults
        mu = jnp.mean(y, axis=1, keepdims=True)
        yc = y - mu
        var = jnp.mean(yc * yc, axis=1, keepdims=True)
        yn = yc * jax.lax.rsqrt(var + eps)
        yn = yn * gamma_ref[...] + beta_ref[...]

        # log_softmax over the gene axis
        m = jnp.max(yn, axis=1, keepdims=True)
        z = yn - m
        lse = jnp.log(jnp.sum(jnp.exp(z), axis=1, keepdims=True))
        o_ref[...] = (z - lse).astype(o_ref.dtype)


# ------------------------------ wrappers ------------------------------------

def graphconv1_fold(at, xt, w_rel_t, w_root_t, b1, wm_rel, wm_root):
    """conv1 + ReLU + mean-folded conv2 projections.

    Returns (t_rel [B,1,nn_pad] bf16, t_root [B,1,nn_pad] f32).
    """
    B, C, nn_pad = xt.shape
    H = w_rel_t.shape[0]

    def fits(t):
        est = (2 * (t * t * 2)          # A^T tile, double-buffered, bf16
               + 2 * 2 * (C * t * 2)    # X^T src + dst, double-buffered, bf16
               + C * t * 4              # f32 accumulator scratch
               + 2 * (t * 2 + t * 4))   # two tiny per-tile outputs
        return est <= _TILE_BUDGET

    tn = _pick_tile(nn_pad, fits)
    tk = tn
    grid = (B, nn_pad // tn, nn_pad // tk)

    cost = pl.CostEstimate(
        flops=2 * B * nn_pad * nn_pad * C + 4 * B * nn_pad * C * H
              + 4 * B * nn_pad * H,
        transcendentals=0,
        bytes_accessed=B * nn_pad * nn_pad * 2
                       + B * C * nn_pad * 2 * (nn_pad // tn)
                       + B * C * nn_pad * 2 + B * nn_pad * 6
                       + (2 * H * C + 3 * H) * 4,
    )

    return pl.pallas_call(
        _conv1_kernel,
        out_shape=(jax.ShapeDtypeStruct((B, 1, nn_pad), jnp.bfloat16),
                   jax.ShapeDtypeStruct((B, 1, nn_pad), jnp.float32)),
        grid=grid,
        in_specs=[
            pl.BlockSpec((None, tk, tn), lambda b, j, k: (b, k, j)),   # A^T
            pl.BlockSpec((None, C, tk), lambda b, j, k: (b, 0, k)),    # X^T src
            pl.BlockSpec((None, C, tn), lambda b, j, k: (b, 0, j)),    # X^T dst
            pl.BlockSpec((H, C), lambda b, j, k: (0, 0)),              # W_rel1^T
            pl.BlockSpec((H, C), lambda b, j, k: (0, 0)),              # W_root1^T
            pl.BlockSpec((H, 1), lambda b, j, k: (0, 0)),              # b_rel1^T
            pl.BlockSpec((1, H), lambda b, j, k: (0, 0)),              # mean(W_rel2,1)
            pl.BlockSpec((1, H), lambda b, j, k: (0, 0)),              # mean(W_root2,1)
        ],
        out_specs=[
            pl.BlockSpec((None, 1, tn), lambda b, j, k: (b, 0, j)),    # t_rel
            pl.BlockSpec((None, 1, tn), lambda b, j, k: (b, 0, j)),    # t_root
        ],
        scratch_shapes=[pltpu.VMEM((C, tn), jnp.float32)],
        compiler_params=pltpu.CompilerParams(
            dimension_semantics=("parallel", "parallel", "arbitrary"),
            vmem_limit_bytes=_VMEM_LIMIT),
        cost_estimate=cost,
    )(at, xt, xt, w_rel_t, w_root_t, b1, wm_rel, wm_root)


def conv2_mean_ln_logsoftmax(at, t_rel, t_root, b2_mean, gamma, beta,
                             *, num_gene, eps=1e-5):
    """Fused mean-folded conv2 (gene columns only) + LayerNorm + log_softmax."""
    B, nn_pad, _ = at.shape
    gpad = min(nn_pad, _round_up(num_gene, _LANE))

    def fits(t):
        est = 2 * (t * gpad * 2) + 2 * (t * 2) + 3 * gpad * 4
        return est <= _TILE_BUDGET

    tk = _pick_tile(nn_pad, fits)
    grid = (B, nn_pad // tk)
    kern = functools.partial(_conv2_ln_kernel, num_gene=num_gene, eps=eps)

    cost = pl.CostEstimate(
        flops=2 * B * nn_pad * gpad + 12 * B * num_gene,
        transcendentals=2 * B * num_gene,
        bytes_accessed=B * nn_pad * gpad * 2 + B * nn_pad * 2 + B * gpad * 4
                       + B * num_gene * 4 + 2 * num_gene * 4,
    )

    return pl.pallas_call(
        kern,
        out_shape=jax.ShapeDtypeStruct((B, 1, num_gene), jnp.float32),
        grid=grid,
        in_specs=[
            pl.BlockSpec((None, tk, gpad), lambda b, k: (b, k, 0)),    # A^T genes
            pl.BlockSpec((None, 1, tk), lambda b, k: (b, 0, k)),       # t_rel
            pl.BlockSpec((None, 1, gpad), lambda b, k: (b, 0, 0)),     # t_root
            pl.BlockSpec((1, 1), lambda b, k: (0, 0)),                 # mean(b_rel2)
            pl.BlockSpec((1, num_gene), lambda b, k: (0, 0)),          # LN gamma
            pl.BlockSpec((1, num_gene), lambda b, k: (0, 0)),          # LN beta
        ],
        out_specs=pl.BlockSpec((None, 1, num_gene), lambda b, k: (b, 0, 0)),
        scratch_shapes=[pltpu.VMEM((1, gpad), jnp.float32)],
        compiler_params=pltpu.CompilerParams(
            dimension_semantics=("parallel", "arbitrary"),
            vmem_limit_bytes=_VMEM_LIMIT),
        cost_estimate=cost,
    )(at, t_rel, t_root, b2_mean, gamma, beta)


def gcn_forward(params, x, at, batchsize, num_gene):
    B = batchsize
    N, C = x.shape
    assert N % B == 0
    nn = N // B
    nn_pad = at.shape[1]
    assert at.shape == (B, nn_pad, nn_pad) and nn_pad % _LANE == 0 and nn_pad >= nn
    assert num_gene <= nn

    # layout glue: per-graph transposed features, bf16, zero-padded node axis
    xt = jnp.transpose(x.reshape(B, nn, C), (0, 2, 1)).astype(jnp.bfloat16)
    if nn_pad > nn:
        xt = jnp.pad(xt, ((0, 0), (0, 0), (0, nn_pad - nn)))

    # fold the hidden-dim mean of conv2 into per-node scalars (mean is linear)
    wm_rel = jnp.mean(params["w_rel2"], axis=1, keepdims=True).T       # [1, H]
    wm_root = jnp.mean(params["w_root2"], axis=1, keepdims=True).T     # [1, H]
    b2_mean = jnp.mean(params["b_rel2"]).reshape(1, 1)                 # [1, 1]

    t_rel, t_root = graphconv1_fold(at, xt,
                                    params["w_rel1"].T, params["w_root1"].T,
                                    params["b_rel1"].T, wm_rel, wm_root)

    # TODO(synk): when num_gene ~ nn (slice pushdown saves little), fuse conv2's
    # aggregation into conv1 so A^T is streamed from HBM exactly once.
    out3 = conv2_mean_ln_logsoftmax(at, t_rel, t_root, b2_mean,
                                    params["ln_gamma"], params["ln_beta"],
                                    num_gene=num_gene)                 # [B,1,G]
    return out3.reshape(B, num_gene)


# ------------------------------ setup / ref ----------------------------------

def build_batched_adjacency_t(edge_index, edge_weight, batchsize, num_nodes,
                              padded_nodes=None):
    """A^T[g, src_local, dst_local] += w (PyG 'add' aggregation, src -> dst).

    Built directly at the lane-padded size so kernels always see 128-multiple
    node axes; padded rows/cols are zero and contribute nothing.
    Assumes PyG-style batching: contiguous per-graph node numbering and no
    cross-graph edges (same assumption the original x.view(...) makes).
    """
    if padded_nodes is None:
        padded_nodes = _round_up(num_nodes, _LANE)
    src, dst = edge_index[0], edge_index[1]
    if edge_weight is None:
        edge_weight = jnp.ones((edge_index.shape[1],), jnp.float32)
    g = src // num_nodes
    at = jnp.zeros((batchsize, padded_nodes, padded_nodes), jnp.float32)
    at = at.at[g, src % num_nodes, dst % num_nodes].add(edge_weight)
    return at.astype(jnp.bfloat16)


def init_params(key, input_channels, hidden_channels, num_gene):
    ks = jax.random.split(key, 6)
    s1 = 1.0 / jnp.sqrt(input_channels)
    s2 = 1.0 / jnp.sqrt(hidden_channels)
    return {
        # conv1: GraphConv(input_channels, hidden_channels)
        "w_rel1": jax.random.uniform(ks[0], (input_channels, hidden_channels),
                                     jnp.float32, -s1, s1),
        "w_root1": jax.random.uniform(ks[1], (input_channels, hidden_channels),
                                      jnp.float32, -s1, s1),
        "b_rel1": jax.random.uniform(ks[2], (1, hidden_channels),
                                     jnp.float32, -s1, s1),
        # conv2: GraphConv(hidden_channels, hidden_channels)
        "w_rel2": jax.random.uniform(ks[3], (hidden_channels, hidden_channels),
                                     jnp.float32, -s2, s2),
        "w_root2": jax.random.uniform(ks[4], (hidden_channels, hidden_channels),
                                      jnp.float32, -s2, s2),
        "b_rel2": jax.random.uniform(ks[5], (1, hidden_channels),
                                     jnp.float32, -s2, s2),
        # LayerNorm(num_gene): default affine init
        "ln_gamma": jnp.ones((1, num_gene), jnp.float32),
        "ln_beta": jnp.zeros((1, num_gene), jnp.float32),
    }


def _reference_forward(params, x, at, batchsize, num_gene, eps=1e-5):
    """Plain-JAX reference with the kernel's bf16 casts matched."""
    B = batchsize
    nn_pad = at.shape[1]
    N, C = x.shape
    nn = N // B
    a = jnp.transpose(at.astype(jnp.float32), (0, 2, 1))       # A[g, dst, src]
    xg = x.reshape(B, nn, C)
    if nn_pad > nn:
        xg = jnp.pad(xg, ((0, 0), (0, nn_pad - nn), (0, 0)))
    xb = xg.astype(jnp.bfloat16).astype(jnp.float32)
    agg = jnp.einsum("bds,bsc->bdc", a, xb)
    h1 = jnp.maximum(jnp.einsum("bdc,ch->bdh", agg, params["w_rel1"])
                     + jnp.einsum("bdc,ch->bdh", xb, params["w_root1"])
                     + params["b_rel1"][None, :, :], 0.0)
    wm_rel = jnp.mean(params["w_rel2"], axis=1)
    wm_root = jnp.mean(params["w_root2"], axis=1)
    t_rel = (h1 @ wm_rel).astype(jnp.bfloat16).astype(jnp.float32)   # [B, nn_pad]
    t_root = h1 @ wm_root
    row = (jnp.einsum("bds,bs->bd", a, t_rel) + t_root
           + jnp.mean(params["b_rel2"]))
    y = row[:, :num_gene]
    mu = jnp.mean(y, axis=1, keepdims=True)
    var = jnp.mean((y - mu) ** 2, axis=1, keepdims=True)
    y = (y - mu) * jax.lax.rsqrt(var + eps)
    y = y * params["ln_gamma"] + params["ln_beta"]
    return jax.nn.log_softmax(y, axis=1)


if __name__ == "__main__":
    # small shapes consistent with the module
    batchsize = 2
    num_nodes = 16          # nodes per graph
    input_channels = 4
    hidden_channels = 32
    num_gene = 8
    N = batchsize * num_nodes

    key = jax.random.PRNGKey(0)
    kx, kw, kp = jax.random.split(key, 3)

    # node features [N, C]
    x = jax.random.normal(kx, (N, input_channels), jnp.float32)

    # batch assignment vector (PyG-style); only used to derive batchsize
    batch = jnp.repeat(jnp.arange(batchsize), num_nodes)
    assert int(jnp.unique(batch).shape[0]) == batchsize

    # synthetic edge_index: bidirectional ring within each graph
    src_list, dst_list = [], []
    for g in range(batchsize):
        off = g * num_nodes
        for i in range(num_nodes):
            j = (i + 1) % num_nodes
            src_list += [off + i, off + j]
            dst_list += [off + j, off + i]
    edge_index = jnp.array([src_list, dst_list], jnp.int32)
    edge_weight = jax.random.uniform(kw, (edge_index.shape[1],), jnp.float32,
                                     0.5, 1.5)

    at = build_batched_adjacency_t(edge_index, edge_weight, batchsize, num_nodes)
    params = init_params(kp, input_channels, hidden_channels, num_gene)

    fwd = jax.jit(lambda p, xx, aa: gcn_forward(p, xx, aa, batchsize, num_gene))
    out = jax.block_until_ready(fwd(params, x, at))

    assert out.shape == (batchsize, num_gene)
    # log_softmax rows must exponentiate-sum to ~1
    assert jnp.allclose(jnp.sum(jnp.exp(out), axis=1), 1.0, atol=1e-4)
    # cross-check against a plain-JAX reference with matched casts
    ref = _reference_forward(params, x, at, batchsize, num_gene)
    assert jnp.allclose(out, ref, atol=5e-2), (out, ref)
    print("KERNEL_OK")
</pallas_src>

<mosaic_0001>
module attributes {stable_mosaic.version = 11 : i64} {
  func.func @_conv1_kernel(%arg0: i32, %arg1: i32, %arg2: i32, %arg3: memref<1x128x128xbf16, #tpu.memory_space<vmem>>, %arg4: memref<1x4x128xbf16, #tpu.memory_space<vmem>>, %arg5: memref<1x4x128xbf16, #tpu.memory_space<vmem>>, %arg6: memref<32x4xf32, #tpu.memory_space<vmem>>, %arg7: memref<32x4xf32, #tpu.memory_space<vmem>>, %arg8: memref<32x1xf32, #tpu.memory_space<vmem>>, %arg9: memref<1x32xf32, #tpu.memory_space<vmem>>, %arg10: memref<1x32xf32, #tpu.memory_space<vmem>>, %arg11: memref<1x1x128xbf16, #tpu.memory_space<vmem>>, %arg12: memref<1x1x128xf32, #tpu.memory_space<vmem>>, %arg13: memref<4x128xf32, #tpu.memory_space<vmem>>) attributes {dimension_semantics = [#tpu.dimension_semantics<parallel>, #tpu.dimension_semantics<parallel>, #tpu.dimension_semantics<arbitrary>], iteration_bounds = array<i64: 2, 1, 1>, scalar_prefetch = 0 : i64, scratch_operands = 1 : i64, tpu.core_type = #tpu.core_type<tc>, window_params = [{transform_indices = @transform_0, window_bounds = array<i64: 1, 128, 128>}, {transform_indices = @transform_1, window_bounds = array<i64: 1, 4, 128>}, {transform_indices = @transform_2, window_bounds = array<i64: 1, 4, 128>}, {pipeline_mode = #tpu.pipeline_mode<synchronous>, transform_indices = @transform_3, window_bounds = array<i64: 32, 4>}, {pipeline_mode = #tpu.pipeline_mode<synchronous>, transform_indices = @transform_4, window_bounds = array<i64: 32, 4>}, {pipeline_mode = #tpu.pipeline_mode<synchronous>, transform_indices = @transform_5, window_bounds = array<i64: 32, 1>}, {pipeline_mode = #tpu.pipeline_mode<synchronous>, transform_indices = @transform_6, window_bounds = array<i64: 1, 32>}, {pipeline_mode = #tpu.pipeline_mode<synchronous>, transform_indices = @transform_7, window_bounds = array<i64: 1, 32>}, {transform_indices = @transform_8, window_bounds = array<i64: 1, 1, 128>}, {transform_indices = @transform_9, window_bounds = array<i64: 1, 1, 128>}]} {
    %c0_i32 = arith.constant 0 : i32
    %0 = arith.cmpi eq, %arg2, %c0_i32 : i32
    %1 = arith.extui %0 : i1 to i32
    %c0_i32_0 = arith.constant 0 : i32
    %2 = arith.cmpi ne, %1, %c0_i32_0 : i32
    scf.if %2 {
      %cst_12 = arith.constant 0.000000e+00 : f32
      %14 = vector.broadcast %cst_12 : f32 to vector<4x128xf32>
      %c0_13 = arith.constant 0 : index
      %c0_14 = arith.constant 0 : index
      %15 = vector.load %arg13[%c0_13, %c0_14] : memref<4x128xf32, #tpu.memory_space<vmem>>, vector<4x128xf32>
      tpu.vector_store %arg13[%c0_13, %c0_14], %14 {strides = array<i32>} : memref<4x128xf32, #tpu.memory_space<vmem>>, vector<4x128xf32>,
    } else {
    }
    %c0 = arith.constant 0 : index
    %c0_1 = arith.constant 0 : index
    %3 = vector.load %arg13[%c0, %c0_1] : memref<4x128xf32, #tpu.memory_space<vmem>>, vector<4x128xf32>
    %c0_2 = arith.constant 0 : index
    %c0_3 = arith.constant 0 : index
    %c0_4 = arith.constant 0 : index
    %4 = vector.load %arg4[%c0_2, %c0_3, %c0_4] : memref<1x4x128xbf16, #tpu.memory_space<vmem>>, vector<1x4x128xbf16>
    %5 = vector.shape_cast %4 : vector<1x4x128xbf16> to vector<4x128xbf16>
    %c0_5 = arith.constant 0 : index
    %c0_6 = arith.constant 0 : index
    %c0_7 = arith.constant 0 : index
    %6 = vector.load %arg3[%c0_5, %c0_6, %c0_7] : memref<1x128x128xbf16, #tpu.memory_space<vmem>>, vector<1x128x128xbf16>
    %7 = vector.shape_cast %6 : vector<1x128x128xbf16> to vector<128x128xbf16>
    %cst = arith.constant dense<0.000000e+00> : vector<4x128xf32>
    %8 = tpu.matmul %5, %7, %cst {dimension_numbers = #tpu.dot_dimension_numbers<[1], [0], [0], [1], [0, 0, 1, 1], [], []>} : vector<4x128xbf16>, vector<128x128xbf16>, vector<4x128xf32> -> vector<4x128xf32>
    %9 = arith.addf %3, %8 : vector<4x128xf32>
    %c0_8 = arith.constant 0 : index
    %c0_9 = arith.constant 0 : index
    %10 = vector.load %arg13[%c0_8, %c0_9] : memref<4x128xf32, #tpu.memory_space<vmem>>, vector<4x128xf32>
    tpu.vector_store %arg13[%c0_8, %c0_9], %9 {strides = array<i32>} : memref<4x128xf32, #tpu.memory_space<vmem>>, vector<4x128xf32>,
    %c0_i32_10 = arith.constant 0 : i32
    %11 = arith.cmpi eq, %arg2, %c0_i32_10 : i32
    %12 = arith.extui %11 : i1 to i32
    %c0_i32_11 = arith.constant 0 : i32
    %13 = arith.cmpi ne, %12, %c0_i32_11 : i32
    scf.if %13 {
      %c0_12 = arith.constant 0 : index
      %c0_13 = arith.constant 0 : index
      %14 = vector.load %arg6[%c0_12, %c0_13] : memref<32x4xf32, #tpu.memory_space<vmem>>, vector<32x4xf32>
      %c0_14 = arith.constant 0 : index
      %c0_15 = arith.constant 0 : index
      %15 = vector.load %arg13[%c0_14, %c0_15] : memref<4x128xf32, #tpu.memory_space<vmem>>, vector<4x128xf32>
      %cst_16 = arith.constant dense<0.000000e+00> : vector<32x128xf32>
      %16 = tpu.matmul %14, %15, %cst_16 {dimension_numbers = #tpu.dot_dimension_numbers<[1], [0], [0], [1], [0, 0, 1, 1], [], []>} : vector<32x4xf32>, vector<4x128xf32>, vector<32x128xf32> -> vector<32x128xf32>
      %c0_17 = arith.constant 0 : index
      %c0_18 = arith.constant 0 : index
      %17 = vector.load %arg7[%c0_17, %c0_18] : memref<32x4xf32, #tpu.memory_space<vmem>>, vector<32x4xf32>
      %c0_19 = arith.constant 0 : index
      %c0_20 = arith.constant 0 : index
      %c0_21 = arith.constant 0 : index
      %18 = vector.load %arg5[%c0_19, %c0_20, %c0_21] : memref<1x4x128xbf16, #tpu.memory_space<vmem>>, vector<1x4x128xbf16>
      %19 = vector.shape_cast %18 : vector<1x4x128xbf16> to vector<4x128xbf16>
      %20 = arith.extf %19 : vector<4x128xbf16> to vector<4x128xf32>
      %cst_22 = arith.constant dense<0.000000e+00> : vector<32x128xf32>
      %21 = tpu.matmul %17, %20, %cst_22 {dimension_numbers = #tpu.dot_dimension_numbers<[1], [0], [0], [1], [0, 0, 1, 1], [], []>} : vector<32x4xf32>, vector<4x128xf32>, vector<32x128xf32> -> vector<32x128xf32>
      %22 = arith.addf %16, %21 : vector<32x128xf32>
      %c0_23 = arith.constant 0 : index
      %c0_24 = arith.constant 0 : index
      %23 = vector.load %arg8[%c0_23, %c0_24] : memref<32x1xf32, #tpu.memory_space<vmem>>, vector<32x1xf32>
      %24 = vector.broadcast %23 : vector<32x1xf32> to vector<32x128xf32>
      %25 = arith.addf %22, %24 : vector<32x128xf32>
      %cst_25 = arith.constant 0.000000e+00 : f32
      %26 = vector.broadcast %cst_25 : f32 to vector<32x128xf32>
      %27 = arith.maximumf %25, %26 : vector<32x128xf32>
      %c0_26 = arith.constant 0 : index
      %c0_27 = arith.constant 0 : index
      %28 = vector.load %arg9[%c0_26, %c0_27] : memref<1x32xf32, #tpu.memory_space<vmem>>, vector<1x32xf32>
      %cst_28 = arith.constant dense<0.000000e+00> : vector<1x128xf32>
      %29 = tpu.matmul %28, %27, %cst_28 {dimension_numbers = #tpu.dot_dimension_numbers<[1], [0], [0], [1], [0, 0, 1, 1], [], []>} : vector<1x32xf32>, vector<32x128xf32>, vector<1x128xf32> -> vector<1x128xf32>
      %30 = arith.truncf %29 : vector<1x128xf32> to vector<1x128xbf16>
      %c0_29 = arith.constant 0 : index
      %c0_30 = arith.constant 0 : index
      %c0_31 = arith.constant 0 : index
      %31 = vector.load %arg11[%c0_29, %c0_30, %c0_31] : memref<1x1x128xbf16, #tpu.memory_space<vmem>>, vector<1x1x128xbf16>
      %32 = vector.shape_cast %31 : vector<1x1x128xbf16> to vector<1x128xbf16>
      %33 = vector.shape_cast %30 : vector<1x128xbf16> to vector<1x1x128xbf16>
      tpu.vector_store %arg11[%c0_29, %c0_30, %c0_31], %33 {strides = array<i32>} : memref<1x1x128xbf16, #tpu.memory_space<vmem>>, vector<1x1x128xbf16>,
      %c0_32 = arith.constant 0 : index
      %c0_33 = arith.constant 0 : index
      %34 = vector.load %arg10[%c0_32, %c0_33] : memref<1x32xf32, #tpu.memory_space<vmem>>, vector<1x32xf32>
      %cst_34 = arith.constant dense<0.000000e+00> : vector<1x128xf32>
      %35 = tpu.matmul %34, %27, %cst_34 {dimension_numbers = #tpu.dot_dimension_numbers<[1], [0], [0], [1], [0, 0, 1, 1], [], []>} : vector<1x32xf32>, vector<32x128xf32>, vector<1x128xf32> -> vector<1x128xf32>
      %c0_35 = arith.constant 0 : index
      %c0_36 = arith.constant 0 : index
      %c0_37 = arith.constant 0 : index
      %36 = vector.load %arg12[%c0_35, %c0_36, %c0_37] : memref<1x1x128xf32, #tpu.memory_space<vmem>>, vector<1x1x128xf32>
      %37 = vector.shape_cast %36 : vector<1x1x128xf32> to vector<1x128xf32>
      %38 = vector.shape_cast %35 : vector<1x128xf32> to vector<1x1x128xf32>
      tpu.vector_store %arg12[%c0_35, %c0_36, %c0_37], %38 {strides = array<i32>} : memref<1x1x128xf32, #tpu.memory_space<vmem>>, vector<1x1x128xf32>,
    } else {
    }
    return
  }
  func.func @transform_0(%arg0: i32, %arg1: i32, %arg2: i32) -> (i32, i32, i32) {
    %c0_i32 = arith.constant 0 : i32
    return %arg0, %arg2, %arg1 : i32, i32, i32
  }
  func.func @transform_1(%arg0: i32, %arg1: i32, %arg2: i32) -> (i32, i32, i32) {
    %c0_i32 = arith.constant 0 : i32
    %c0_i32_0 = arith.constant 0 : i32
    return %arg0, %c0_i32, %arg2 : i32, i32, i32
  }
  func.func @transform_2(%arg0: i32, %arg1: i32, %arg2: i32) -> (i32, i32, i32) {
    %c0_i32 = arith.constant 0 : i32
    %c0_i32_0 = arith.constant 0 : i32
    return %arg0, %c0_i32, %arg1 : i32, i32, i32
  }
  func.func @transform_3(%arg0: i32, %arg1: i32, %arg2: i32) -> (i32, i32) {
    %c0_i32 = arith.constant 0 : i32
    %c0_i32_0 = arith.constant 0 : i32
    %c0_i32_1 = arith.constant 0 : i32
    return %c0_i32, %c0_i32_0 : i32, i32
  }
  func.func @transform_4(%arg0: i32, %arg1: i32, %arg2: i32) -> (i32, i32) {
    %c0_i32 = arith.constant 0 : i32
    %c0_i32_0 = arith.constant 0 : i32
    %c0_i32_1 = arith.constant 0 : i32
    return %c0_i32, %c0_i32_0 : i32, i32
  }
  func.func @transform_5(%arg0: i32, %arg1: i32, %arg2: i32) -> (i32, i32) {
    %c0_i32 = arith.constant 0 : i32
    %c0_i32_0 = arith.constant 0 : i32
    %c0_i32_1 = arith.constant 0 : i32
    return %c0_i32, %c0_i32_0 : i32, i32
  }
  func.func @transform_6(%arg0: i32, %arg1: i32, %arg2: i32) -> (i32, i32) {
    %c0_i32 = arith.constant 0 : i32
    %c0_i32_0 = arith.constant 0 : i32
    %c0_i32_1 = arith.constant 0 : i32
    return %c0_i32, %c0_i32_0 : i32, i32
  }
  func.func @transform_7(%arg0: i32, %arg1: i32, %arg2: i32) -> (i32, i32) {
    %c0_i32 = arith.constant 0 : i32
    %c0_i32_0 = arith.constant 0 : i32
    %c0_i32_1 = arith.constant 0 : i32
    return %c0_i32, %c0_i32_0 : i32, i32
  }
  func.func @transform_8(%arg0: i32, %arg1: i32, %arg2: i32) -> (i32, i32, i32) {
    %c0_i32 = arith.constant 0 : i32
    %c0_i32_0 = arith.constant 0 : i32
    return %arg0, %c0_i32, %arg1 : i32, i32, i32
  }
  func.func @transform_9(%arg0: i32, %arg1: i32, %arg2: i32) -> (i32, i32, i32) {
    %c0_i32 = arith.constant 0 : i32
    %c0_i32_0 = arith.constant 0 : i32
    return %arg0, %c0_i32, %arg1 : i32, i32, i32
  }
}

module attributes {stable_mosaic.version = 11 : i64} {
  func.func @_conv2_ln_kernel(%arg0: i32, %arg1: i32, %arg2: memref<1x128x128xbf16, #tpu.memory_space<vmem>>, %arg3: memref<1x1x128xbf16, #tpu.memory_space<vmem>>, %arg4: memref<1x1x128xf32, #tpu.memory_space<vmem>>, %arg5: memref<1x1xf32, #tpu.memory_space<vmem>>, %arg6: memref<1x8xf32, #tpu.memory_space<vmem>>, %arg7: memref<1x8xf32, #tpu.memory_space<vmem>>, %arg8: memref<1x1x8xf32, #tpu.memory_space<vmem>>, %arg9: memref<1x128xf32, #tpu.memory_space<vmem>>) attributes {dimension_semantics = [#tpu.dimension_semantics<parallel>, #tpu.dimension_semantics<arbitrary>], iteration_bounds = array<i64: 2, 1>, scalar_prefetch = 0 : i64, scratch_operands = 1 : i64, tpu.core_type = #tpu.core_type<tc>, window_params = [{transform_indices = @transform_0, window_bounds = array<i64: 1, 128, 128>}, {transform_indices = @transform_1, window_bounds = array<i64: 1, 1, 128>}, {transform_indices = @transform_2, window_bounds = array<i64: 1, 1, 128>}, {pipeline_mode = #tpu.pipeline_mode<synchronous>, transform_indices = @transform_3, window_bounds = array<i64: 1, 1>}, {pipeline_mode = #tpu.pipeline_mode<synchronous>, transform_indices = @transform_4, window_bounds = array<i64: 1, 8>}, {pipeline_mode = #tpu.pipeline_mode<synchronous>, transform_indices = @transform_5, window_bounds = array<i64: 1, 8>}, {transform_indices = @transform_6, window_bounds = array<i64: 1, 1, 8>}]} {
    %c0_i32 = arith.constant 0 : i32
    %0 = arith.cmpi eq, %arg1, %c0_i32 : i32
    %1 = arith.extui %0 : i1 to i32
    %c0_i32_0 = arith.constant 0 : i32
    %2 = arith.cmpi ne, %1, %c0_i32_0 : i32
    scf.if %2 {
      %cst_12 = arith.constant 0.000000e+00 : f32
      %14 = vector.broadcast %cst_12 : f32 to vector<1x128xf32>
      %c0_13 = arith.constant 0 : index
      %c0_14 = arith.constant 0 : index
      %15 = vector.load %arg9[%c0_13, %c0_14] : memref<1x128xf32, #tpu.memory_space<vmem>>, vector<1x128xf32>
      tpu.vector_store %arg9[%c0_13, %c0_14], %14 {strides = array<i32>} : memref<1x128xf32, #tpu.memory_space<vmem>>, vector<1x128xf32>,
    } else {
    }
    %c0 = arith.constant 0 : index
    %c0_1 = arith.constant 0 : index
    %3 = vector.load %arg9[%c0, %c0_1] : memref<1x128xf32, #tpu.memory_space<vmem>>, vector<1x128xf32>
    %c0_2 = arith.constant 0 : index
    %c0_3 = arith.constant 0 : index
    %c0_4 = arith.constant 0 : index
    %4 = vector.load %arg3[%c0_2, %c0_3, %c0_4] : memref<1x1x128xbf16, #tpu.memory_space<vmem>>, vector<1x1x128xbf16>
    %5 = vector.shape_cast %4 : vector<1x1x128xbf16> to vector<1x128xbf16>
    %c0_5 = arith.constant 0 : index
    %c0_6 = arith.constant 0 : index
    %c0_7 = arith.constant 0 : index
    %6 = vector.load %arg2[%c0_5, %c0_6, %c0_7] : memref<1x128x128xbf16, #tpu.memory_space<vmem>>, vector<1x128x128xbf16>
    %7 = vector.shape_cast %6 : vector<1x128x128xbf16> to vector<128x128xbf16>
    %cst = arith.constant dense<0.000000e+00> : vector<1x128xf32>
    %8 = tpu.matmul %5, %7, %cst {dimension_numbers = #tpu.dot_dimension_numbers<[1], [0], [0], [1], [0, 0, 1, 1], [], []>} : vector<1x128xbf16>, vector<128x128xbf16>, vector<1x128xf32> -> vector<1x128xf32>
    %9 = arith.addf %3, %8 : vector<1x128xf32>
    %c0_8 = arith.constant 0 : index
    %c0_9 = arith.constant 0 : index
    %10 = vector.load %arg9[%c0_8, %c0_9] : memref<1x128xf32, #tpu.memory_space<vmem>>, vector<1x128xf32>
    tpu.vector_store %arg9[%c0_8, %c0_9], %9 {strides = array<i32>} : memref<1x128xf32, #tpu.memory_space<vmem>>, vector<1x128xf32>,
    %c0_i32_10 = arith.constant 0 : i32
    %11 = arith.cmpi eq, %arg1, %c0_i32_10 : i32
    %12 = arith.extui %11 : i1 to i32
    %c0_i32_11 = arith.constant 0 : i32
    %13 = arith.cmpi ne, %12, %c0_i32_11 : i32
    scf.if %13 {
      %c0_12 = arith.constant 0 : index
      %c0_13 = arith.constant 0 : index
      %14 = vector.load %arg9[%c0_12, %c0_13] : memref<1x128xf32, #tpu.memory_space<vmem>>, vector<1x128xf32>
      %c0_14 = arith.constant 0 : index
      %c0_15 = arith.constant 0 : index
      %c0_16 = arith.constant 0 : index
      %15 = vector.load %arg4[%c0_14, %c0_15, %c0_16] : memref<1x1x128xf32, #tpu.memory_space<vmem>>, vector<1x1x128xf32>
      %16 = vector.shape_cast %15 : vector<1x1x128xf32> to vector<1x128xf32>
      %17 = arith.addf %14, %16 : vector<1x128xf32>
      %c0_17 = arith.constant 0 : index
      %c0_18 = arith.constant 0 : index
      %18 = vector.load %arg5[%c0_17, %c0_18] : memref<1x1xf32, #tpu.memory_space<vmem>>, vector<1x1xf32>
      %19 = vector.broadcast %18 : vector<1x1xf32> to vector<1x128xf32>
      %20 = arith.addf %17, %19 : vector<1x128xf32>
      %21 = vector.extract_strided_slice %20 {offsets = [0, 0], sizes = [1, 8], strides = [1, 1]} : vector<1x128xf32> to vector<1x8xf32>
      %cst_19 = arith.constant dense<0.000000e+00> : vector<1xf32>
      %22 = vector.multi_reduction <add>, %21, %cst_19 [1] : vector<1x8xf32> to vector<1xf32>
      %23 = vector.shape_cast %22 : vector<1xf32> to vector<1x1xf32>
      %cst_20 = arith.constant 8.000000e+00 : f32
      %24 = vector.broadcast %cst_20 : f32 to vector<1x1xf32>
      %25 = arith.divf %23, %24 : vector<1x1xf32>
      %26 = vector.broadcast %25 : vector<1x1xf32> to vector<1x8xf32>
      %27 = arith.subf %21, %26 : vector<1x8xf32>
      %28 = arith.mulf %27, %27 : vector<1x8xf32>
      %cst_21 = arith.constant dense<0.000000e+00> : vector<1xf32>
      %29 = vector.multi_reduction <add>, %28, %cst_21 [1] : vector<1x8xf32> to vector<1xf32>
      %30 = vector.shape_cast %29 : vector<1xf32> to vector<1x1xf32>
      %cst_22 = arith.constant 8.000000e+00 : f32
      %31 = vector.broadcast %cst_22 : f32 to vector<1x1xf32>
      %32 = arith.divf %30, %31 : vector<1x1xf32>
      %cst_23 = arith.constant 9.99999974E-6 : f32
      %33 = vector.broadcast %cst_23 : f32 to vector<1x1xf32>
      %34 = arith.addf %32, %33 : vector<1x1xf32>
      %35 = math.rsqrt %34 : vector<1x1xf32>
      %36 = vector.broadcast %35 : vector<1x1xf32> to vector<1x8xf32>
      %37 = arith.mulf %27, %36 : vector<1x8xf32>
      %c0_24 = arith.constant 0 : index
      %c0_25 = arith.constant 0 : index
      %38 = vector.load %arg6[%c0_24, %c0_25] : memref<1x8xf32, #tpu.memory_space<vmem>>, vector<1x8xf32>
      %39 = arith.mulf %37, %38 : vector<1x8xf32>
      %c0_26 = arith.constant 0 : index
      %c0_27 = arith.constant 0 : index
      %40 = vector.load %arg7[%c0_26, %c0_27] : memref<1x8xf32, #tpu.memory_space<vmem>>, vector<1x8xf32>
      %41 = arith.addf %39, %40 : vector<1x8xf32>
      %cst_28 = arith.constant dense<0xFF800000> : vector<1xf32>
      %42 = vector.multi_reduction <maximumf>, %41, %cst_28 [1] : vector<1x8xf32> to vector<1xf32>
      %43 = vector.shape_cast %42 : vector<1xf32> to vector<1x1xf32>
      %44 = vector.broadcast %43 : vector<1x1xf32> to vector<1x8xf32>
      %45 = arith.subf %41, %44 : vector<1x8xf32>
      %46 = math.exp %45 : vector<1x8xf32>
      %cst_29 = arith.constant dense<0.000000e+00> : vector<1xf32>
      %47 = vector.multi_reduction <add>, %46, %cst_29 [1] : vector<1x8xf32> to vector<1xf32>
      %48 = vector.shape_cast %47 : vector<1xf32> to vector<1x1xf32>
      %49 = math.log %48 : vector<1x1xf32>
      %50 = vector.broadcast %49 : vector<1x1xf32> to vector<1x8xf32>
      %51 = arith.subf %45, %50 : vector<1x8xf32>
      %c0_30 = arith.constant 0 : index
      %c0_31 = arith.constant 0 : index
      %c0_32 = arith.constant 0 : index
      %52 = vector.load %arg8[%c0_30, %c0_31, %c0_32] : memref<1x1x8xf32, #tpu.memory_space<vmem>>, vector<1x1x8xf32>
      %53 = vector.shape_cast %52 : vector<1x1x8xf32> to vector<1x8xf32>
      %54 = vector.shape_cast %51 : vector<1x8xf32> to vector<1x1x8xf32>
      tpu.vector_store %arg8[%c0_30, %c0_31, %c0_32], %54 {strides = array<i32>} : memref<1x1x8xf32, #tpu.memory_space<vmem>>, vector<1x1x8xf32>,
    } else {
    }
    return
  }
  func.func @transform_0(%arg0: i32, %arg1: i32) -> (i32, i32, i32) {
    %c0_i32 = arith.constant 0 : i32
    %c0_i32_0 = arith.constant 0 : i32
    return %arg0, %arg1, %c0_i32 : i32, i32, i32
  }
  func.func @transform_1(%arg0: i32, %arg1: i32) -> (i32, i32, i32) {
    %c0_i32 = arith.constant 0 : i32
    %c0_i32_0 = arith.constant 0 : i32
    return %arg0, %c0_i32, %arg1 : i32, i32, i32
  }
  func.func @transform_2(%arg0: i32, %arg1: i32) -> (i32, i32, i32) {
    %c0_i32 = arith.constant 0 : i32
    %c0_i32_0 = arith.constant 0 : i32
    %c0_i32_1 = arith.constant 0 : i32
    return %arg0, %c0_i32, %c0_i32_0 : i32, i32, i32
  }
  func.func @transform_3(%arg0: i32, %arg1: i32) -> (i32, i32) {
    %c0_i32 = arith.constant 0 : i32
    %c0_i32_0 = arith.constant 0 : i32
    %c0_i32_1 = arith.constant 0 : i32
    return %c0_i32, %c0_i32_0 : i32, i32
  }
  func.func @transform_4(%arg0: i32, %arg1: i32) -> (i32, i32) {
    %c0_i32 = arith.constant 0 : i32
    %c0_i32_0 = arith.constant 0 : i32
    %c0_i32_1 = arith.constant 0 : i32
    return %c0_i32, %c0_i32_0 : i32, i32
  }
  func.func @transform_5(%arg0: i32, %arg1: i32) -> (i32, i32) {
    %c0_i32 = arith.constant 0 : i32
    %c0_i32_0 = arith.constant 0 : i32
    %c0_i32_1 = arith.constant 0 : i32
    return %c0_i32, %c0_i32_0 : i32, i32
  }
  func.func @transform_6(%arg0: i32, %arg1: i32) -> (i32, i32, i32) {
    %c0_i32 = arith.constant 0 : i32
    %c0_i32_0 = arith.constant 0 : i32
    %c0_i32_1 = arith.constant 0 : i32
    return %arg0, %c0_i32, %c0_i32_0 : i32, i32, i32
  }
}

</mosaic_0001>

<bundles_post_ra>
// kernel: _lambda_.2
= control target key start
LH: loop header
LB: loop body
LE: loop exit
PB: predicated region body
PF: predicated region fallthrough
CT: control target
= control target key end

     0   :  { %s1368_s30 = smov 0   ;;  %s1370_s10 = smov 0   ;;  %s1485_s0 = inlined_call_operand.vmem [shape: bf16[2,128,128], index: 0, kind: input, shape index: {}]   ;;  %s1486_s1 = inlined_call_operand.vmem [shape: bf16[2,4,128], index: 1, kind: input, shape index: {}, may-alias: {1,2}]   ;;  %s1487_s2 = inlined_call_operand.vmem [shape: bf16[2,4,128], index: 2, kind: input, shape index: {}, may-alias: {1,2}]   ;;  %s1488_s3 = inlined_call_operand.vmem [shape: f32[32,4], index: 3, kind: input, shape index: {}]   ;;  %s1489_s4 = inlined_call_operand.vmem [shape: f32[32,4], index: 4, kind: input, shape index: {}]   ;;  %s1490_s5 = inlined_call_operand.vmem [shape: f32[32,1], index: 5, kind: input, shape index: {}]   ;;  %s1491_s6 = inlined_call_operand.vmem [shape: f32[1,32], index: 6, kind: input, shape index: {}]   ;;  %s1492_s7 = inlined_call_operand.vmem [shape: f32[1,32], index: 7, kind: input, shape index: {}]   ;;  %s1493_s8 = inlined_call_operand.vmem [shape: bf16[2,1,128], index: 8, kind: output, shape index: {0}]   ;;  %s1494_s9 = inlined_call_operand.vmem [shape: f32[2,1,128], index: 9, kind: output, shape index: {1}]  }
   0x1   :  { %s1372_s11 = smov 0  }
   0x2 LB: > { %s39_s12 = sadd.s32 1, %s1308_s10  ;;  %p1121_p0 = scmp.ge.s32.totalorder %s1312_s11, 1  ;;  %s1312_s11 = sphi %s1372_s11, %s20_s11   ;;  %s1308_s10 = sphi %s1370_s10, %s1496_s10   ;;  %s1304_s30 = sphi %s1368_s30, %s1495_s30  }
   0x3   : > { %p41_p1 = scmp.ge.s32.totalorder %s39_s12, 2  ;;  %p353_p2 = scmp.lt.s32.totalorder %s1312_s11, 3 }
   0x5   : > { %s1498_s12 = smov (%p41_p1, %s39_s12), 0  ;;  %p354_p3 = pnand %p1121_p0, %p353_p2 }
   0x6   : > { %p418_p4 = scmp.lt.s32.totalorder (!%p354_p3), %s1304_s30, 1  ;;  %v1314_v0 = vmov (!%p354_p3), 0.0   ;;  %vm1315_vm0 = vmmov (!%p354_p3), 0   ;;  %vm597_vm1 = vcmask (!%p354_p3), 1043456   ;;  %v578_v12 = vld [vmem:[%s1489_s4] sm:$0xff] (!%p354_p3)  ;;  %vm584_vm2 = vcmask (!%p354_p3), 31744  }
   0x7   : > { %357 = sbr.rel (%p354_p3) target bundleno = 720 (0x2d0), region = 52  ;;  %1178 = vmatprep.subr.bf16.mxu0 (!%p354_p3), %v1314_v0  ;;  %461 = vst [vmem:[#allocation2] sm:$0xf] (!%p354_p3), %v1314_v0  ;;  %1194 = vmatprep.mubr.msk.bf16.mxu0 (!%p354_p3), %vm1315_vm0, %v1314_v0  ;;  %v579_v13 = vld [vmem:[%s1489_s4 + $0x8] sm:$0xff] (!%p354_p3)  ;;  %v580_v14 = vld [vmem:[%s1489_s4 + $0x10] sm:$0xff] (!%p354_p3)  ;;  %v581_v15 = vld [vmem:[%s1489_s4 + $0x18] sm:$0xff] (!%p354_p3) }
   0x8   : > { %1200 = vmatprep.mubr.msk.f32.mxu1 (!%p354_p3), %vm584_vm2, %v578_v12  ;;  %v573_v16 = vld [vmem:[%s1488_s3] sm:$0xff] (!%p354_p3)  ;;  %v788_v18 = vld [vmem:[%s1490_s5 + $0x10] sm:$0xff] (!%p354_p3)  ;;  %v1316_v19 = vmov (!%p354_p3), 0   ;;  %v787_v20 = vld [vmem:[%s1490_s5 + $0x8] sm:$0xff] (!%p354_p3)  ;;  %v1317_v32 = vmov (!%p354_p3), 0.0|0.0   ;;  %vm819_vm3 = vcmask (!%p354_p3), 261120  }
   0x9   : > { %v786_v17 = vld [vmem:[%s1490_s5] sm:$0xff] (!%p354_p3)  ;;  %1280 = vset.pattern.permute.xlu0 (!%p354_p3), %v1316_v19  ;;  %1281 = vset.pattern.permute.xlu1 (!%p354_p3), %v1316_v19  ;;  %v789_v21 = vld [vmem:[%s1490_s5 + $0x18] sm:$0xff] (!%p354_p3)  ;;  %v574_v29 = vld [vmem:[%s1488_s3 + $0x8] sm:$0xff] (!%p354_p3)  ;;  %vm894_vm4 = vcmask (!%p354_p3), 1040384   ;;  %vm895_vm5 = vsmask.f32 (!%p354_p3), 256 }
   0xa   : > { %792 = vperm.xlu0 (!%p354_p3), %1280, %v786_v17   ;;  %802 = vperm.xlu1 (!%p354_p3), %1281, %v788_v18   ;;  %v575_v30 = vld [vmem:[%s1488_s3 + $0x10] sm:$0xff] (!%p354_p3)  ;;  %v576_v31 = vld [vmem:[%s1488_s3 + $0x18] sm:$0xff] (!%p354_p3)  ;;  %v818_v51 = vld [vmem:[%s1491_s6] sm:$0x1] (!%p354_p3) }
   0xb   : > { %v900_v52 = vld [vmem:[%s1492_s7] sm:$0x1] (!%p354_p3)  ;;  %vm896_vm6 = vmand (!%p354_p3), %vm894_vm4, %vm895_vm5 }
   0xe   : > { %s1500_s30 = smov (!%p418_p4, %s1304_s30), 1  ;;  %797 = vperm.xlu0 %1280, %v787_v20   ;;  %807 = vperm.xlu1 %1281, %v789_v21   ;;  %v462_v22 = vld [vmem:[#allocation2] sm:$0xf] }
   0xf   : > { %s1148_s13 = sshll.u32 %s1500_s30, 6  ;;  %s1124_s17 = sshll.u32 %s1500_s30, 1 }
  0x10   : > { %s428_s16 = scalar_lea.vmem %s1485_s0, %s1148_s13  ;;  %s436_s20 = scalar_lea.vmem %s1486_s1, %s1124_s17 }
  0x11   : > { %v1282_v1 = vld [vmem:[%s428_s16] sm:$0xff]   ;;  %v1283_v2 = vld [vmem:[%s428_s16 + $0x8] sm:$0xff]   ;;  %v1284_v3 = vld [vmem:[%s428_s16 + $0x10] sm:$0xff]   ;;  %s443_s23 = scalar_lea.vmem %s1487_s2, %s1124_s17 }
  0x12   : > { %1179 = vmatpush3.bf16.msra.mxu0 %v1282_v1  ;;  %v1285_v4 = vld [vmem:[%s428_s16 + $0x18] sm:$0xff]   ;;  %v1286_v5 = vld [vmem:[%s428_s16 + $0x20] sm:$0xff]   ;;  %v1287_v6 = vld [vmem:[%s428_s16 + $0x28] sm:$0xff]  }
  0x13   : > { %1180 = vmatprep.subr.bf16.mxu0 %v1314_v0  ;;  %v1288_v7 = vld [vmem:[%s428_s16 + $0x30] sm:$0xff]   ;;  %v1289_v8 = vld [vmem:[%s428_s16 + $0x38] sm:$0xff]   ;;  %v463_v9 = vld [vmem:[%s436_s20] sm:$0x3]  ;;  %s449_s20 = scalar_lea.vmem %s1493_s8, %s1500_s30 }
  0x14   : > { %v582_v10 = vld [vmem:[%s443_s23] sm:$0x3]  ;;  %s455_s23 = scalar_lea.vmem %s1494_s9, %s1500_s30 }
  0x15   : > { %v583_v11 = vunpack.c.l.bf16 %v582_v10  ;;  %v897_v54 = vld [vmem:[%s449_s20] sm:$0x1] }
  0x16   : > { %1181 = vmatpush3.bf16.msra.mxu0 %v1283_v2 }
  0x17   : > { %1182 = vmatprep.subr.bf16.mxu0 %v1314_v0  ;;  %1198 = vmatprep.subr.msk.mxu1 %vm597_vm1, %v583_v11 }
  0x18   : > { %1199 = vmatpush3.msk.msra.mxu1 %vm597_vm1, %v583_v11 }
  0x19   : > { %1201 = vmatmul.mubr.msk.f32.vlgmr.msra.gmra.mrb[0].mxu1 %vm584_vm2, %v579_v13 }
  0x1a   : > { %1183 = vmatpush3.bf16.msra.mxu0 %v1284_v3  ;;  %1203 = vmatprep.mubr.msk.f32.mxu1 %vm584_vm2, %v580_v14 }
  0x1b   : > { %1184 = vmatprep.subr.bf16.mxu0 %v1314_v0 }
  0x1d   : > { %1204 = vmatmul.mubr.msk.f32.gmra.mrb[2].mxu1 %vm584_vm2, %v581_v15 }
  0x1e   : > { %1185 = vmatpush3.bf16.msra.mxu0 %v1285_v4  ;;  %1208 = vmatprep.mubr.msk.f32.mxu1 %vm584_vm2, %v573_v16 }
  0x1f   : > { %1186 = vmatprep.subr.bf16.mxu0 %v1314_v0 }
  0x22   : > { %1187 = vmatpush3.bf16.msra.mxu0 %v1286_v5 }
  0x23   : > { %1188 = vmatprep.subr.bf16.mxu0 %v1314_v0 }
  0x26   : > { %1189 = vmatpush3.bf16.msra.mxu0 %v1287_v6 }
  0x27   : > { %1190 = vmatprep.subr.bf16.mxu0 %v1314_v0 }
  0x2a   : > { %1191 = vmatpush3.bf16.msra.mxu0 %v1288_v7 }
  0x2b   : > { %1192 = vmatprep.subr.bf16.mxu0 %v1314_v0 }
  0x2e   : > { %1193 = vmatpush3.bf16.msra.mxu0 %v1289_v8 }
  0x31   : > { %1195 = vmatmul.mubr.bf16.vlgmr.msra.gmra.mrb[0].mxu0 %v463_v9 }
  0x89   : > { %v793_v33 = vpop.permute.xlu0 %792  ;;  %v803_v34 = vpop.permute.xlu1 %802 }
  0x8d   : > { %v798_v35 = vpop.permute.xlu0 %797  ;;  %v808_v42 = vpop.permute.xlu1 %807 }
 0x104   : > { %v562_v23 = vpop.f32.mrb[0].mxu0 }
 0x105   : > { %v568_v24 = vadd.f32 %v562_v23, %v462_v22  ;;  %v1196_v25 = vpop.f32.mrb[1].mxu0 }
 0x106   : > { %v565_v26 = vpop.f32.mrb[2].mxu0 }
 0x107   : > { %569 = vst [vmem:[#allocation2] sm:$0xf] %v568_v24  ;;  %v1197_v27 = vpop.f32.mrb[3].mxu0 }
 0x10e   : > { %v577_v28 = vld [vmem:[#allocation2] sm:$0xf] }
 0x10f   : > { %1206 = vmatprep.subr.msk.mxu1 %vm597_vm1, %v577_v28 }
 0x110   : > { %1207 = vmatpush3.msk.msra.mxu1 %vm597_vm1, %v577_v28 }
 0x111   : > { %1209 = vmatmul.mubr.msk.f32.vlgmr.msra.gmra.mrb[0].mxu1 %vm584_vm2, %v574_v29  ;;  %1236 = vmatprep.subr.bf16.mxu1 %v1317_v32 }
 0x112   : > { %1211 = vmatprep.mubr.msk.f32.mxu1 %vm584_vm2, %v575_v30 }
 0x115   : > { %1212 = vmatmul.mubr.msk.f32.gmra.mrb[2].mxu1 %vm584_vm2, %v576_v31 }
 0x116   : > { %1222 = vmatprep.mubr.msk.f32.mxu1 %vm1315_vm0, %v1314_v0 }
 0x1e4   : > { %v1210_v36 = vpop.f32.mrb[0].mxu1 }
 0x1e5   : > { %v811_v37 = vadd.f32 %v1210_v36, %v798_v35  ;;  %v767_v38 = vpop.f32.mrb[1].mxu1 }
 0x1e6   : > { %v810_v39 = vadd.f32 %v793_v33, %v767_v38 }
 0x1e7   : > { %v815_v40 = vmax.f32 %v811_v37, 0.0 }
 0x1e8   : > { %v814_v41 = vmax.f32 %v810_v39, 0.0  ;;  %v1213_v43 = vpop.f32.mrb[2].mxu1 }
 0x1e9   : > { %v813_v44 = vadd.f32 %v1213_v43, %v808_v42  ;;  %v777_v45 = vpop.f32.mrb[3].mxu1 }
 0x1ea   : > { %v1237_v46 = vpack.c.bf16 %v815_v40, %v814_v41  ;;  %v812_v47 = vadd.f32 %v803_v34, %v777_v45 }
 0x1eb   : > { %v817_v48 = vmax.f32 %v813_v44, 0.0 }
 0x1ec   : > { %v816_v49 = vmax.f32 %v812_v47, 0.0  ;;  %1238 = vmatpush3.bf16.msra.mxu1 %v1237_v46 }
 0x1ed   : > { %1239 = vmatprep.subr.bf16.mxu1 %v1317_v32 }
 0x1ee   : > { %v1240_v50 = vpack.c.bf16 %v817_v48, %v816_v49 }
 0x1f0   : > { %1241 = vmatpush3.bf16.msra.mxu1 %v1240_v50 }
 0x1f1   : > { %1242 = vmatprep.subr.bf16.mxu1 %v1317_v32 }
 0x1f3   : > { %1223 = vmatmul.mubr.msk.f32.vlgmr.msra.gmra.mrb[4].mxu1 %vm819_vm3, %v818_v51 }
 0x1f4   : > { %1244 = vmatpush3.bf16.msra.mxu1 %v1237_v46  ;;  %1233 = vmatprep.mubr.msk.f32.mxu1 %vm1315_vm0, %v1314_v0 }
 0x1f5   : > { %1245 = vmatprep.subr.bf16.mxu1 %v1317_v32 }
 0x1f8   : > { %1247 = vmatpush3.bf16.msra.mxu1 %v1240_v50 }
 0x1fb   : > { %1234 = vmatmul.mubr.msk.f32.vlgmr.msra.gmra.mrb[6].mxu1 %vm819_vm3, %v900_v52 }
 0x2c6   : > { %v889_v53 = vpop.f32.mrb[4].mxu1 }
 0x2c7   : > { %v893_v55 = vpack.c.bf16 %v889_v53, %v889_v53  ;;  %v1224_v56 = vpop.f32.mrb[5].mxu1 }
 0x2c9   : > { %v898_v57 = vsel %vm896_vm6, %v893_v55, %v897_v54 }
 0x2ca   : > { %899 = vst [vmem:[%s449_s20] sm:$0x1] %v898_v57 }
 0x2ce   : > { %v970_v58 = vpop.f32.mrb[6].mxu1 }
 0x2cf   : > { %974 = vst [vmem:[%s455_s23] sm:$0x1] %v970_v58  ;;  %v1235_v59 = vpop.f32.mrb[7].mxu1 }
 0x2d0 PF: > { %s20_s11 = sadd.s32 1, %s1312_s11   ;;  %s1495_s30 = smov %s1308_s10 }
 0x2d1   : > { %p17_p5 = scmp.ge.s32.totalorder %s20_s11, 4   ;;  %s1496_s10 = smov %s1498_s12 }
 0x2d3   :  { %19 = sbr.rel (!%p17_p5) target bundleno = 2 (0x2), region = 108 }

// kernel: _lambda_.3
= control target key start
LH: loop header
LB: loop body
LE: loop exit
PB: predicated region body
PF: predicated region fallthrough
CT: control target
= control target key end

     0   :  { %s961_s0 = inlined_call_operand.vmem [shape: bf16[2,128,128], index: 0, kind: input, shape index: {}]   ;;  %s962_s1 = inlined_call_operand.vmem [shape: bf16[2,1,128], index: 1, kind: input, shape index: {}]   ;;  %s963_s2 = inlined_call_operand.vmem [shape: f32[2,1,128], index: 2, kind: input, shape index: {}]   ;;  %s964_s3 = inlined_call_operand.<no memory space> [shape: f32[1,1], index: 3, kind: input, shape index: {}]   ;;  %s965_s4 = inlined_call_operand.vmem [shape: f32[1,8], index: 4, kind: input, shape index: {}]   ;;  %s966_s5 = inlined_call_operand.vmem [shape: f32[1,8], index: 5, kind: input, shape index: {}]   ;;  %s967_s6 = inlined_call_operand.hbm [shape: f32[2,1,8], index: 6, kind: output, shape index: {}]  }
   0x1   :  { %v11_v0 = vstv %s964_s3 }
   0x2   :  { %12 = vst [vmem:[#allocation3] sm:$0x1] %v11_v0 }
   0x3   :  { %13 = vsyncpa [#allocation5], 0 }
   0x4   :  { %15 = vsyncpa [#allocation5 + $0x1], 0  ;;  %s827_s23 = smov 0   ;;  %s829_s24 = smov 0  }
   0x5   :  { %s831_s25 = smov 0   ;;  %s833_s26 = smov 0  }
   0x6   :  { %s835_s27 = smov 0   ;;  %s837_s28 = smov 0  }
   0x7 LB: > { %s584_s3 = sadd.s32 4294967295, %s783_s28   ;;  %s585_s29 = sadd.s32 4294967294, %s783_s28   ;;  %s783_s28 = sphi %s837_s28, %s21_s28   ;;  %s779_s27 = sphi %s835_s27, %s974_s27   ;;  %s775_s26 = sphi %s833_s26, %s973_s26   ;;  %s771_s25 = sphi %s831_s25, %s972_s25   ;;  %s767_s24 = sphi %s829_s24, %s971_s24   ;;  %s763_s23 = sphi %s827_s23, %s970_s23  }
   0x8   : > { %s33_s30 = sadd.s32 1, %s779_s27  ;;  %s185_s7 = sadd.s32 1, %s771_s25 }
   0x9   : > { %p35_p0 = scmp.ge.s32.totalorder %s33_s30, 2  ;;  %p195_p1 = scmp.ne.s32.totalorder %s771_s25, %s767_s24 }
   0xa   : > { %p196_p2 = scmp.eq.s32.totalorder %s584_s3, 1  ;;  %p201_p3 = scmp.ne.s32.totalorder %s767_s24, %s763_s23 }
   0xb   : > { %s976_s30 = smov (%p35_p0, %s33_s30), 0  ;;  %p202_p5 = scmp.eq.s32.totalorder %s585_s29, 1 }
   0xc   : > { %p867_p4 = por %p196_p2, %p195_p1  ;;  %s182_s9 = ssub.s32 %s779_s27, %s976_s30 }
   0xd   : > { %p588_p6 = scmp.ge.s32.totalorder %s783_s28, 1  ;;  %p183_p7 = scmp.eq.s32.totalorder %s182_s9, 0 }
   0xe   : > { %p874_p8 = por %p202_p5, %p201_p3  ;;  %p257_p9 = scmp.lt.s32.totalorder %s783_s28, 3 }
   0xf   : > { %s880_s11 = scalar_select %p183_p7, %s771_s25, %s185_s7  }
  0x10   : > { %p258_p10 = pnand %p588_p6, %p257_p9 }
  0x11   : > { %p300_p11 = scmp.lt.s32.totalorder (!%p258_p10), %s775_s26, 1  ;;  %v438_v1 = vld [vmem:[#allocation3] sm:$0x1] (!%p258_p10)  ;;  %v785_v2 = vmov (!%p258_p10), 0.0   ;;  %vm786_vm0 = vmmov (!%p258_p10), 0   ;;  %v787_v3 = vmov (!%p258_p10), 0   ;;  %v444_v13 = vlaneseq (!%p258_p10) }
  0x12   : > { %261 = sbr.rel (%p258_p10) target bundleno = 930 (0x3a2), region = 44  ;;  %612 = vmatprep.subr.bf16.mxu0 (!%p258_p10), %v785_v2  ;;  %323 = vst [vmem:[#allocation2] sm:$0x1] (!%p258_p10), %v785_v2  ;;  %628 = vmatprep.mubr.msk.bf16.mxu0 (!%p258_p10), %vm786_vm0, %v785_v2  ;;  %vm449_vm1 = vcmask (!%p258_p10), 57344   ;;  %v464_v38 = vld [vmem:[%s965_s4] sm:$0x1] (!%p258_p10) }
  0x13   : > { %690 = vset.pattern.permute.xlu0 (!%p258_p10), %v787_v3  ;;  %v445_v18 = vshrl.u32 (!%p258_p10), %v444_v13, 7  ;;  %v466_v40 = vld [vmem:[%s966_s5] sm:$0x1] (!%p258_p10) }
  0x14   : > { %441 = vperm.xlu0 (!%p258_p10), %690, %v438_v1  }
  0x15   : > { %v446_v21 = vsub.s32 (!%p258_p10), 0, %v445_v18 }
  0x19   : > { %s884_s12 = scalar_select %p300_p11, %s775_s26, 1  ;;  %v324_v14 = vld [vmem:[#allocation2] sm:$0x1] }
  0x1b   : > { %s602_s13 = sshll.u32 %s884_s12, 6  ;;  %s314_s19 = scalar_lea.vmem %s962_s1, %s884_s12 }
  0x1c   : > { %s307_s16 = scalar_lea.vmem %s961_s0, %s602_s13  ;;  %v325_v12 = vld [vmem:[%s314_s19] sm:$0x1]  ;;  %s317_s22 = scalar_lea.vmem %s963_s2, %s884_s12 }
  0x1d   : > { %v691_v4 = vld [vmem:[%s307_s16] sm:$0xff]   ;;  %v692_v5 = vld [vmem:[%s307_s16 + $0x8] sm:$0xff]   ;;  %v693_v6 = vld [vmem:[%s307_s16 + $0x10] sm:$0xff]   ;;  %s297_s12 = sand.u32 1, %s767_s24   ;;  %s599_s13 = sshll.u32 %s775_s26, 4 }
  0x1e   : > { %613 = vmatpush3.bf16.msra.mxu0 %v691_v4  ;;  %v694_v7 = vld [vmem:[%s307_s16 + $0x18] sm:$0xff]   ;;  %v695_v8 = vld [vmem:[%s307_s16 + $0x20] sm:$0xff]   ;;  %v696_v9 = vld [vmem:[%s307_s16 + $0x28] sm:$0xff]   ;;  %s298_s14 = scalar_lea.vmem [#allocation4], %s297_s12  ;;  %s913_s18 = scalar_lea.hbm %s967_s6, %s599_s13 }
  0x1f   : > { %614 = vmatprep.subr.bf16.mxu0 %v785_v2  ;;  %v697_v10 = vld [vmem:[%s307_s16 + $0x30] sm:$0xff]   ;;  %v698_v11 = vld [vmem:[%s307_s16 + $0x38] sm:$0xff]   ;;  %v436_v23 = vld [vmem:[%s317_s22] sm:$0x1]  ;;  %s494_s15 = sshll.u32 %s298_s14, 4  ;;  %s482_s19 = scalar_lea.sflag [#allocation5], %s297_s12  ;;  %s915_s15 = int_to_ptr.vmem [resolvable:$true] %s494_s15 }
  0x20   : > { %s705_s20 = scalar_lea.vmem %s915_s15, 16  ;;  %s788_s26 = smov [#allocation4]  }
  0x21   : > { %p706_p12 = scmp.ne.s32.totalorder %s915_s15, %s705_s20  ;;  %s709_s21 = sshll.u32 %s788_s26, 4  ;;  %s710_s21 = int_to_ptr.vmem [resolvable:$false] %s709_s21 }
  0x22   : > { %615 = vmatpush3.bf16.msra.mxu0 %v692_v5  ;;  %s711_s22 = scalar_lea.vmem %s710_s21, 32  ;;  %p712_p1 = scmp.lt.s32.totalorder %s915_s15, %s710_s21 }
  0x23   : > { %616 = vmatprep.subr.bf16.mxu0 %v785_v2  ;;  %p707_p13 = pnand %p706_p12, %p867_p4  ;;  %p713_p2 = scmp.lt.s32.totalorder %s711_s22, %s705_s20 }
  0x25   : > { %p708_p0 = pneg %p707_p13  ;;  %p714_p3 = por %p713_p2, %p712_p1 }
  0x26   : > { %617 = vmatpush3.bf16.msra.mxu0 %v693_v6 }
  0x27   : > { %618 = vmatprep.subr.bf16.mxu0 %v785_v2  ;;  %p715_p5 = pnand %p714_p3, %p708_p0 }
  0x2a   : > { %619 = vmatpush3.bf16.msra.mxu0 %v694_v7 }
  0x2b   : > { %620 = vmatprep.subr.bf16.mxu0 %v785_v2 }
  0x2e   : > { %621 = vmatpush3.bf16.msra.mxu0 %v695_v8 }
  0x2f   : > { %622 = vmatprep.subr.bf16.mxu0 %v785_v2 }
  0x32   : > { %623 = vmatpush3.bf16.msra.mxu0 %v696_v9 }
  0x33   : > { %624 = vmatprep.subr.bf16.mxu0 %v785_v2 }
  0x36   : > { %625 = vmatpush3.bf16.msra.mxu0 %v697_v10 }
  0x37   : > { %626 = vmatprep.subr.bf16.mxu0 %v785_v2 }
  0x3a   : > { %627 = vmatpush3.bf16.msra.mxu0 %v698_v11 }
  0x3d   : > { %629 = vmatmul.mubr.bf16.vlgmr.msra.gmra.mrb[0].mxu0 %v325_v12 }
  0x93   : > { %v442_v22 = vpop.permute.xlu0 %441 }
  0x94   : > { %v447_v24 = vrot.slane %v442_v22, %v446_v21 }
 0x110   : > { %v424_v15 = vpop.f32.mrb[0].mxu0 }
 0x111   : > { %v430_v16 = vadd.f32 %v424_v15, %v324_v14  ;;  %v630_v17 = vpop.f32.mrb[1].mxu0 }
 0x112   : > { %v427_v19 = vpop.f32.mrb[2].mxu0 }
 0x113   : > { %431 = vst [vmem:[#allocation2] sm:$0x1] %v430_v16  ;;  %v631_v20 = vpop.f32.mrb[3].mxu0 }
 0x11a   : > { %v435_v25 = vld [vmem:[#allocation2] sm:$0x1] }
 0x11b   : > { %v437_v26 = vadd.f32 %v436_v23, %v435_v25 }
 0x11d   : > { %v448_v27 = vadd.f32 %v447_v24, %v437_v26 }
 0x11f   : > { %v450_v28 = vsel %vm449_vm1, %v448_v27, 0.0 }
 0x120   : > { %451 = vadd.xlane.f32.xlu0 %v450_v28 }
 0x1ad   : > { %v452_v29 = vpop.xlane.xlu0 %451 }
 0x1ae   : > { %v454_v30 = vmul.f32 0.125, %v452_v29 }
 0x1b0   : > { %v455_v31 = vsub.f32 %v448_v27, %v454_v30 }
 0x1b2   : > { %v456_v32 = vmul.f32 %v455_v31, %v455_v31 }
 0x1b4   : > { %v457_v33 = vsel %vm449_vm1, %v456_v32, 0.0 }
 0x1b5   : > { %458 = vadd.xlane.f32.xlu1 %v457_v33 }
 0x242   : > { %v459_v34 = vpop.xlane.xlu1 %458 }
 0x243   : > { %v460_v35 = vmul.f32 0.125, %v459_v34 }
 0x245   : > { %v461_v36 = vadd.f32 1e-05, %v460_v35 }
 0x247   : > { %699 = vrsqrt.f32 %v461_v36 }
 0x251   : > { %v700_v37 = vpop.eup %699 }
 0x252   : > { %v463_v39 = vmul.f32 %v700_v37, %v455_v31 }
 0x254   : > { %v465_v41 = vmul.f32 %v464_v38, %v463_v39 }
 0x256   : > { %v467_v42 = vadd.f32 %v466_v40, %v465_v41 }
 0x258   : > { %v468_v43 = vsel %vm449_vm1, %v467_v42, -inf }
 0x259   : > { %469 = vmax.xlane.f32.xlu1 %v468_v43 }
 0x2e6   : > { %v470_v44 = vpop.xlane.xlu1 %469 }
 0x2e7   : > { %v471_v45 = vsub.f32 %v467_v42, %v470_v44 }
 0x2e9   : > { %v472_v46 = vmul.f32 1.442695, %v471_v45 }
 0x2eb   : > { %701 = vpow2.f32 %v472_v46 }
 0x2f5   : > { %v702_v47 = vpop.eup %701 }
 0x2f6   : > { %v474_v48 = vsel %vm449_vm1, %v702_v47, 0.0 }
 0x2f7   : > { %475 = vadd.xlane.f32.xlu1 %v474_v48 }
 0x384   : > { %v476_v49 = vpop.xlane.xlu1 %475 }
 0x385   : > { %703 = vlog2.f32 %v476_v49 }
 0x38f   : > { %v704_v50 = vpop.eup %703 }
 0x390   : > { %v478_v51 = vmul.f32 0.6931472, %v704_v50 }
 0x392   : > { %v479_v52 = vsub.f32 %v471_v45, %v478_v51 }
 0x394   : > { %480 = vst.msk [vmem:[%s298_s14] sm:$0x1] %vm449_vm1, %v479_v52 }
 0x395   : > { %718 = shalt.err (!%p715_p5)
}
 0x396   : > { %s719_s3 = scalar_lea.hbm %s913_s18, 16  ;;  %s723_s9 = scalar_lea.hbm %s967_s6, 32 }
 0x397   : > { %p720_p6 = scmp.ne.s32.totalorder %s913_s18, %s719_s3  ;;  %p724_p10 = scmp.lt.u32.totalorder %s913_s18, %s967_s6 }
 0x398   : > { %p725_p11 = scmp.lt.u32.totalorder %s723_s9, %s719_s3  ;;  %p727_p13 = scmp.lt.u32.totalorder %s719_s3, %s913_s18 }
 0x399   : > { %p721_p7 = pnand %p720_p6, %p867_p4 }
 0x39a   : > { %p726_p12 = por %p725_p11, %p724_p10 }
 0x39b   : > { %p722_p9 = pneg %p721_p7 }
 0x39c   : > { %p728_p0 = por %p727_p13, %p726_p12 }
 0x39e   : > { %p729_p1 = pnand %p728_p0, %p722_p9 }
 0x3a0   : > { %732 = shalt.err (!%p729_p1)
}
 0x3a1   : > { %632 = dma.vmem_to_hbm [thread:$0]  (%p867_p4), %s915_s15, 16, %s913_s18, %s482_s19  }
 0x3a2 PF: > { %p638_p2 = scmp.ge.s32.totalorder %s783_s28, 2  ;;  %s506_s14 = sand.u32 1, %s763_s23  }
 0x3a3   : > { %s507_s16 = scalar_lea.sflag [#allocation5], %s506_s14 }
 0x3a4   : > { %p635_p3 = pnand %p638_p2, %p874_p8 }
 0x3a6   : > { %758 = dma.done.wait (!%p635_p3), %s507_s16, 16  }
 0x3a7   : > { %760 = vsyncadd (!%p635_p3), %s507_s16, 4294967280  ;;  %s21_s28 = sadd.s32 1, %s783_s28   ;;  %s970_s23 = smov %s767_s24 }
 0x3a8   : > { %p18_p5 = scmp.ge.s32.totalorder %s21_s28, 4   ;;  %s971_s24 = smov %s771_s25 }
 0x3a9   : > { %s972_s25 = smov %s880_s11  ;;  %s973_s26 = smov %s779_s27 }
 0x3aa   : > { %s974_s27 = smov %s976_s30  ;;  %20 = sbr.rel (!%p18_p5) target bundleno = 7 (0x7), region = 93 }
 0x3b1   :  { %511 = vsyncpa [#allocation5], 1 }
 0x3b2   :  { %513 = vsyncpa [#allocation5 + $0x1], 1 }

</bundles_post_ra>
